<compile_context>
chip_gen: v7x
topology: tpu7x:2x2x1
jax: 0.10.0
libtpu: 0.0.40
codegen_flags: <defaults>
</compile_context>

<pallas_src>
import functools

import jax
import jax.numpy as jnp
from jax import lax
from jax.experimental import pallas as pl
from jax.experimental.pallas import tpu as pltpu

_DEFAULT_BLOCK_BYTES = 8 * 1024 * 1024   # ~8 MiB blocks: >85% of HBM roofline per step
_LANE = 128


def _round_up(x, m):
    return (x + m - 1) // m * m


# ---------------------------------------------------------------------------
# Kernel 1: the whole H*W extent fits in one block (common CNN-head case).
# No scratch, no init/finalize -- reduce the block and store directly.
# ---------------------------------------------------------------------------
def _pool_single_kernel(x_ref, out_ref, *, inv_hw):
    x = x_ref[...]                                            # (tr, HW), input dtype
    mx = jnp.max(x, axis=-1, keepdims=True)                   # exact in input dtype
    sm = jnp.sum(x.astype(jnp.float32), axis=-1, keepdims=True)
    out_ref[:, 0:1] = mx.astype(out_ref.dtype)                # col 0 = max
    out_ref[:, 1:2] = (sm * inv_hw).astype(out_ref.dtype)     # col 1 = avg


# ---------------------------------------------------------------------------
# Kernel 2: H*W tiled as a trailing reduction ("arbitrary") grid axis.
# fp32 scratch accumulators; tail masking is paid only on the last k block.
# ---------------------------------------------------------------------------
def _pool_tiled_kernel(x_ref, out_ref, max_acc, sum_acc, *,
                       hw, thw, num_k, inv_hw):
    k = pl.program_id(1)

    @pl.when(k == 0)
    def _init():
        max_acc[...] = jnp.full_like(max_acc, -jnp.inf)
        sum_acc[...] = jnp.zeros_like(sum_acc)

    def _accumulate(valid_cols):
        x = x_ref[...].astype(jnp.float32)                    # (tr, thw)
        if valid_cols is None:                                # full block, no mask
            x_max, x_sum = x, x
        else:                                                 # ragged last block only
            col = lax.broadcasted_iota(jnp.int32, (1, thw), 1)
            ok = col < valid_cols                             # (1, thw) row mask
            x_max = jnp.where(ok, x, -jnp.inf)
            x_sum = jnp.where(ok, x, 0.0)
        max_acc[...] = jnp.maximum(max_acc[...],
                                   jnp.max(x_max, axis=-1, keepdims=True))
        sum_acc[...] = sum_acc[...] + jnp.sum(x_sum, axis=-1, keepdims=True)

    valid_last = hw - (num_k - 1) * thw                       # static Python int
    if valid_last == thw:
        _accumulate(None)                                     # HW % thw == 0: never mask
    else:
        @pl.when(k < num_k - 1)
        def _full():
            _accumulate(None)

        @pl.when(k == num_k - 1)
        def _ragged():
            _accumulate(valid_last)

    @pl.when(k == num_k - 1)
    def _finalize():
        out_ref[:, 0:1] = max_acc[...].astype(out_ref.dtype)
        out_ref[:, 1:2] = (sum_acc[...] * inv_hw).astype(out_ref.dtype)


def adaptive_concat_pool2d(x, *, block_bytes=None):
    """AdaptiveConcatPool2d(size=1).forward for NCHW input -> (N, 2C, 1, 1)."""
    N, C, H, W = x.shape
    R, HW = N * C, H * W
    dtype = x.dtype
    if not jnp.issubdtype(dtype, jnp.floating):
        raise NotImplementedError(
            "adaptive_concat_pool2d: float dtypes only (-inf identity for max)")
    itemsize = jnp.dtype(dtype).itemsize
    sub = max(8, 32 // itemsize)            # sublane tile: 8 f32, 16 bf16
    lanes = _round_up(HW, _LANE)            # lane-padded VMEM footprint of one row
    budget = int(block_bytes) if block_bytes else _DEFAULT_BLOCK_BYTES
    inv_hw = 1.0 / HW

    x2 = x.reshape(R, HW)

    if lanes * itemsize * sub <= budget:
        # --- single-block-HW path: tile only over rows. -----------------------
        # TODO(synk): for HW < 128 (7x7 / 14x14 heads) this NCHW layout is
        # DMA-descriptor / per-row-reduce bound (each row is a tiny HBM segment
        # scattered into a 128-lane-padded VMEM row); a lane-dense (HW, N*C)
        # layout fixes that but only pays off if the producer emits
        # channels-last upstream (a standalone transpose costs a full extra
        # pass over the data).
        tr = max(sub, (budget // (lanes * itemsize)) // sub * sub)
        tr = min(tr, _round_up(R, sub))
        if R > sub:
            # Keep >= 2 row blocks (ideally >= 4) so both v7x TensorCores get
            # work on the "parallel" axis; never below one sublane tile.
            tr = min(tr, max(sub, _round_up(pl.cdiv(R, 2), sub)))
        grid = (pl.cdiv(R, tr),)
        kernel = functools.partial(_pool_single_kernel, inv_hw=inv_hw)
        in_specs = [pl.BlockSpec((tr, HW), lambda i: (i, 0))]
        out_specs = pl.BlockSpec((tr, 2), lambda i: (i, 0))
        scratch_shapes = []
        dim_sem = ("parallel",)
        in_blk = _round_up(tr, sub) * lanes * itemsize
        scratch_bytes = 0
    else:
        # --- k-tiled path: huge feature maps, HW is a reduction grid axis. ----
        tr = min(64, _round_up(R, sub))     # small row tile: (tr,1) accumulator
                                            # traffic is ~8 vregs per multi-MiB block
        thw = max(_LANE, (budget // (tr * itemsize)) // _LANE * _LANE)
        thw = min(thw, lanes)
        num_k = pl.cdiv(HW, thw)
        grid = (pl.cdiv(R, tr), num_k)
        kernel = functools.partial(_pool_tiled_kernel, hw=HW, thw=thw,
                                   num_k=num_k, inv_hw=inv_hw)
        in_specs = [pl.BlockSpec((tr, thw), lambda i, k: (i, k))]
        out_specs = pl.BlockSpec((tr, 2), lambda i, k: (i, 0))
        scratch_shapes = [pltpu.VMEM((tr, 1), jnp.float32),   # running max
                          pltpu.VMEM((tr, 1), jnp.float32)]   # running f32 sum
        dim_sem = ("parallel", "arbitrary")
        in_blk = tr * thw * itemsize
        scratch_bytes = 2 * tr * _LANE * 4

    # Double-buffered input + output blocks + scratch + margin. The (tr, 2)
    # output block is lane-padded to 128 in VMEM, hence the *_LANE term.
    out_blk = _round_up(tr, sub) * _LANE * itemsize
    vmem_need = 2 * in_blk + 2 * out_blk + scratch_bytes + (4 << 20)
    vmem_limit = int(min(max(32 << 20, vmem_need), 48 << 20))  # <= v7x 64 MiB physical

    out = pl.pallas_call(
        kernel,
        out_shape=jax.ShapeDtypeStruct((R, 2), dtype),
        grid_spec=pltpu.PrefetchScalarGridSpec(
            num_scalar_prefetch=0,
            grid=grid,
            in_specs=in_specs,
            out_specs=out_specs,
            scratch_shapes=scratch_shapes,
        ),
        compiler_params=pltpu.CompilerParams(
            dimension_semantics=dim_sem,
            vmem_limit_bytes=vmem_limit,
        ),
        cost_estimate=pl.CostEstimate(
            flops=2 * R * HW,
            transcendentals=0,
            bytes_accessed=R * HW * itemsize + 2 * R * itemsize,
        ),
    )(x2)

    # (R, 2) -> (N, 2C, 1, 1) with [max, avg] channel order (tiny reshape/transpose).
    return out.reshape(N, C, 2).transpose(0, 2, 1).reshape(N, 2 * C, 1, 1)


def _reference(x):
    return jnp.concatenate(
        [jnp.max(x, axis=(2, 3), keepdims=True),
         jnp.mean(x, axis=(2, 3), keepdims=True)],
        axis=1,
    )


if __name__ == "__main__":
    key = jax.random.PRNGKey(0)

    # Main example: N=2, C=4, 16x16 feature map, f32 (single-block path).
    x = jax.random.normal(key, (2, 4, 16, 16), dtype=jnp.float32)
    out = jax.block_until_ready(adaptive_concat_pool2d(x))
    assert out.shape == (2, 8, 1, 1), out.shape
    assert jnp.allclose(out, _reference(x), atol=1e-5, rtol=1e-5)

    # Odd shapes: N*C not a multiple of the row tile (partial trailing row block).
    x2 = jax.random.normal(jax.random.PRNGKey(1), (3, 5, 7, 7), dtype=jnp.float32)
    out2 = jax.block_until_ready(adaptive_concat_pool2d(x2))
    assert jnp.allclose(out2, _reference(x2), atol=1e-5, rtol=1e-5)

    # Force the k-tiled path with a ragged last column block (small block budget).
    x3 = jax.random.normal(jax.random.PRNGKey(2), (2, 3, 127, 129),
                           dtype=jnp.float32)
    out3 = jax.block_until_ready(
        adaptive_concat_pool2d(x3, block_bytes=128 * 1024))
    assert jnp.allclose(out3, _reference(x3), atol=1e-4, rtol=1e-4)

    # bf16 input: max path stays in bf16, mean accumulated in f32.
    x4 = x.astype(jnp.bfloat16)
    out4 = jax.block_until_ready(adaptive_concat_pool2d(x4))
    ref4 = _reference(x4.astype(jnp.float32))
    assert jnp.allclose(out4.astype(jnp.float32), ref4, atol=2e-2, rtol=2e-2)

    print("KERNEL_OK")
</pallas_src>

<mosaic_0001>
module attributes {stable_mosaic.version = 11 : i64} {
  func.func @_pool_single_kernel(%arg0: i32, %arg1: memref<8x256xf32, #tpu.memory_space<vmem>>, %arg2: memref<8x2xf32, #tpu.memory_space<vmem>>) attributes {dimension_semantics = [#tpu.dimension_semantics<parallel>], iteration_bounds = array<i64: 1>, scalar_prefetch = 0 : i64, scratch_operands = 0 : i64, tpu.core_type = #tpu.core_type<tc>, window_params = [{transform_indices = @transform_0, window_bounds = array<i64: 8, 256>}, {transform_indices = @transform_1, window_bounds = array<i64: 8, 2>}]} {
    %c0 = arith.constant 0 : index
    %c0_0 = arith.constant 0 : index
    %0 = vector.load %arg1[%c0, %c0_0] : memref<8x256xf32, #tpu.memory_space<vmem>>, vector<8x256xf32>
    %cst = arith.constant dense<0xFF800000> : vector<8xf32>
    %1 = vector.multi_reduction <maximumf>, %0, %cst [1] : vector<8x256xf32> to vector<8xf32>
    %2 = vector.shape_cast %1 : vector<8xf32> to vector<8x1xf32>
    %cst_1 = arith.constant dense<0.000000e+00> : vector<8xf32>
    %3 = vector.multi_reduction <add>, %0, %cst_1 [1] : vector<8x256xf32> to vector<8xf32>
    %4 = vector.shape_cast %3 : vector<8xf32> to vector<8x1xf32>
    %c0_2 = arith.constant 0 : index
    %c0_3 = arith.constant 0 : index
    %5 = vector.load %arg2[%c0_2, %c0_3] : memref<8x2xf32, #tpu.memory_space<vmem>>, vector<8x1xf32>
    tpu.vector_store %arg2[%c0_2, %c0_3], %2 {strides = array<i32>} : memref<8x2xf32, #tpu.memory_space<vmem>>, vector<8x1xf32>,
    %cst_4 = arith.constant 3.906250e-03 : f32
    %6 = vector.broadcast %cst_4 : f32 to vector<8x1xf32>
    %7 = arith.mulf %4, %6 : vector<8x1xf32>
    %c0_5 = arith.constant 0 : index
    %c1 = arith.constant 1 : index
    %8 = vector.load %arg2[%c0_5, %c1] : memref<8x2xf32, #tpu.memory_space<vmem>>, vector<8x1xf32>
    tpu.vector_store %arg2[%c0_5, %c1], %7 {strides = array<i32>} : memref<8x2xf32, #tpu.memory_space<vmem>>, vector<8x1xf32>,
    return
  }
  func.func @transform_0(%arg0: i32) -> (i32, i32) {
    %c0_i32 = arith.constant 0 : i32
    %c0_i32_0 = arith.constant 0 : i32
    return %arg0, %c0_i32 : i32, i32
  }
  func.func @transform_1(%arg0: i32) -> (i32, i32) {
    %c0_i32 = arith.constant 0 : i32
    %c0_i32_0 = arith.constant 0 : i32
    return %arg0, %c0_i32 : i32, i32
  }
}

</mosaic_0001>

<bundles_post_ra>
// kernel: tpu_custom_call.1
= control target key start
LH: loop header
LB: loop body
LE: loop exit
PB: predicated region body
PF: predicated region fallthrough
CT: control target
= control target key end

     0   :  { %6 = vsyncpa [#allocation3], 0  ;;  %s63_s6 = smov [#allocation2]   ;;  %s92_s0 = inlined_call_operand.hbm [shape: f32[8,256], index: 0, kind: input, shape index: {}]   ;;  %s93_s1 = inlined_call_operand.vmem [shape: f32[8,2], index: 1, kind: output, shape index: {}]  }
   0x1   :  { %s13_s7 = sshll.u32 %s63_s6, 4  ;;  %s39_s10 = scalar_lea.hbm %s92_s0, 256  ;;  %s14_s7 = int_to_ptr.vmem [resolvable:$true] %s13_s7 }
   0x2   :  { %p40_p0 = scmp.ne.s32.totalorder %s92_s0, %s39_s10  ;;  %p43_p1 = scmp.lt.u32.totalorder %s39_s10, %s92_s0 }
   0x4   :  { %p45_p2 = pnand %p43_p1, %p40_p0 }
   0x6   :  { %48 = shalt.err (!%p45_p2)
}
   0x7   :  { %s49_s15 = scalar_lea.vmem %s14_s7, 256  ;;  %p54_p4 = scmp.lt.s32.totalorder %s14_s7, %s14_s7 }
   0x8   :  { %p50_p3 = scmp.ne.s32.totalorder %s14_s7, %s49_s15  ;;  %p55_p5 = scmp.lt.s32.totalorder %s49_s15, %s49_s15 }
   0xa   :  { %p56_p6 = por %p55_p5, %p54_p4 }
   0xc   :  { %p57_p7 = pnand %p56_p6, %p50_p3 }
   0xe   :  { %60 = shalt.err (!%p57_p7)
}
   0xf   :  { %16 = dma.hbm_to_vmem [thread:$0]  %s92_s0, 256, %s14_s7, [#allocation3]  }
  0x10   :  { %61 = dma.done.wait [#allocation3], 256  }
  0x11   :  { %62 = vsyncadd [#allocation3], 4294967040  ;;  %v20_v0 = vld [vmem:[#allocation2] sm:$0xff]  ;;  %v21_v1 = vld [vmem:[#allocation2 + $0x8] sm:$0xff]  ;;  %vm28_vm0 = vcmask 7168   ;;  %vm31_vm1 = vcmask 15368  }
  0x12   :  { %v25_v2 = vadd.f32 %v21_v1, %v20_v0  ;;  %v22_v3 = vmax.f32 %v20_v0, %v21_v1 }
  0x14   :  { %26 = vadd.xlane.f32.xlu0 %v25_v2 }
  0x18   :  { %23 = vmax.xlane.f32.xlu0 %v22_v3 }
  0xa1   :  { %v27_v4 = vpop.xlane.xlu0 %26 }
  0xa2   :  { %v30_v5 = vmul.f32 0.00390625, %v27_v4 }
  0xa5   :  { %v24_v6 = vpop.xlane.xlu0 %23 }
  0xa6   :  { %29 = vst.msk [vmem:[%s93_s1] sm:$0xff] %vm28_vm0, %v24_v6 }
  0xa7   :  { %32 = vst.msk [vmem:[%s93_s1] sm:$0xff] %vm31_vm1, %v30_v5 }
  0xa8   :  { %37 = vsyncpa [#allocation3], 1 }

</bundles_post_ra>
